<compile_context>
chip_gen: v5e
topology: v5e:2x2
jax: 0.10.0
libtpu: 0.0.40
codegen_flags: <defaults>
</compile_context>

<pallas_src>
import functools
import math

import jax
import jax.numpy as jnp
from jax.experimental import pallas as pl
from jax.experimental.pallas import tpu as pltpu


# ----------------------------------------------------------------------------- helpers

_GELU_C = 0.7978845608028654  # sqrt(2/pi)


def _gelu_tanh(x):
    # tanh-approx GELU (matches the in-file reference).
    # TODO(synk): switch to exact erf-GELU if cfg.MODEL.BERT.HIDDEN_ACT requires it.
    return 0.5 * x * (1.0 + jnp.tanh(_GELU_C * (x + 0.044715 * x * x * x)))


def _round_up(n, m):
    return ((n + m - 1) // m) * m


@functools.lru_cache(maxsize=None)
def _vmem_capacity_bytes():
    try:
        return int(pltpu.get_tpu_info().vmem_capacity_bytes)
    except Exception:
        return 64 << 20  # conservative (v7x per-TC physical VMEM)


def _scoped_vmem(need_bytes):
    # Size the scoped-VMEM request to what this call actually needs (+50% and a small constant of
    # slack) instead of a blanket maximum, so surrounding XLA fusions are not starved (esp. v5e).
    cap = _vmem_capacity_bytes()
    req = int(need_bytes) * 3 // 2 + (4 << 20)
    return int(min(max(req, 16 << 20), cap * 3 // 4))


@functools.lru_cache(maxsize=None)
def _single_buffering_supported():
    """Probe whether BlockSpec(pipeline_mode=pl.Buffered(1)) is available and lowers cleanly."""
    try:
        def probe(x_ref, w_ref, o_ref):
            o_ref[...] = x_ref[...] + w_ref[...]

        x = jnp.zeros((16, 128), jnp.float32)
        w = jnp.zeros((8, 128), jnp.float32)
        out = pl.pallas_call(
            probe,
            out_shape=jax.ShapeDtypeStruct((16, 128), jnp.float32),
            grid=(2,),
            in_specs=[pl.BlockSpec((8, 128), lambda i: (i, 0)),
                      pl.BlockSpec((8, 128), lambda i: (0, 0),
                                   pipeline_mode=pl.Buffered(1))],
            out_specs=pl.BlockSpec((8, 128), lambda i: (i, 0)),
        )(x, w)
        jax.block_until_ready(out)
        return True
    except Exception:
        return False


def _resident_spec(block_shape, index_map):
    # Grid-invariant (constant index_map) blocks: double buffering is pure VMEM waste, so request
    # a single buffer when supported (biggest win on v7x where VMEM is 64 MiB).
    if _single_buffering_supported():
        return pl.BlockSpec(block_shape, index_map, pipeline_mode=pl.Buffered(1))
    return pl.BlockSpec(block_shape, index_map)


# ----------------------------------------------------------------------------- fused linear kernel
# linear (+bias) [+GELU] [+residual] [+LayerNorm]  — used for fused QKV, BertSelfOutput,
# BertIntermediate and BertOutput. Dropouts are eval-mode identity.
# TODO(synk): add pltpu.prng_* dropout masks for training-mode use.


def _make_fused_linear_kernel(*, eps, activation, with_residual, with_ln, out_features):
    inv_h = 1.0 / float(out_features)

    def kernel(*refs):
        x_ref, w_ref, b_ref = refs[0], refs[1], refs[2]
        o_ref = refs[-1]
        pos = 3
        res_ref = gamma_ref = beta_ref = None
        if with_residual:
            res_ref = refs[pos]
            pos += 1
        if with_ln:
            gamma_ref, beta_ref = refs[pos], refs[pos + 1]

        # Both MXU operands are already bf16 (cast in the wrapper); accumulate in f32.
        h = jnp.dot(x_ref[...], w_ref[...], preferred_element_type=jnp.float32)
        h = h + b_ref[...].astype(jnp.float32)
        if activation == "gelu":
            h = _gelu_tanh(h)
        if with_residual:
            h = h + res_ref[...].astype(jnp.float32)
        if with_ln:
            mean = jnp.sum(h, axis=-1, keepdims=True) * inv_h
            c = h - mean
            var = jnp.sum(c * c, axis=-1, keepdims=True) * inv_h
            h = c * jax.lax.rsqrt(var + eps)
            h = h * gamma_ref[...].astype(jnp.float32) + beta_ref[...].astype(jnp.float32)
        o_ref[...] = h.astype(o_ref.dtype)

    return kernel


def fused_linear(x, weight, bias, *, residual=None, gamma=None, beta=None,
                 activation=None, eps=1e-12, row_tile=512,
                 matmul_dtype=jnp.bfloat16, out_dtype=None):
    """x: (rows, In); weight: (In, Out) (torch weight transposed); bias/gamma/beta: (Out,)."""
    rows, in_f = x.shape
    out_f = weight.shape[1]
    out_dtype = out_dtype or x.dtype
    with_res = residual is not None
    with_ln = gamma is not None

    # Cast matmul operands (and residual) to bf16 in the wrapper: halves HBM->VMEM DMA bytes and
    # the double-buffered VMEM footprint, removes per-step in-kernel casts, full-rate MXU.
    if matmul_dtype is not None:
        x = x.astype(matmul_dtype)
        weight = weight.astype(matmul_dtype)
        if with_res:
            residual = residual.astype(matmul_dtype)

    x_itemsize = jnp.dtype(x.dtype).itemsize
    w_itemsize = jnp.dtype(weight.dtype).itemsize
    out_itemsize = jnp.dtype(out_dtype).itemsize
    sub = 16 if x_itemsize == 2 else 8

    # Big row tiles to fill the MXU M dim and amortize per-step pipeline overhead; cdiv grid with a
    # zero-padded last tile instead of an exact-divisibility assert.
    tile = max(sub, min(int(row_tile), _round_up(rows, sub)))
    tile = _round_up(tile, sub)
    grid_rows = pl.cdiv(rows, tile)
    rows_p = grid_rows * tile
    if rows_p != rows:
        pad = rows_p - rows
        x = jnp.pad(x, ((0, pad), (0, 0)))
        if with_res:
            residual = jnp.pad(residual, ((0, pad), (0, 0)))

    inputs = [x, weight, bias.reshape(1, out_f)]
    in_specs = [
        pl.BlockSpec((tile, in_f), lambda i: (i, 0)),        # activations, row-tiled
        _resident_spec((in_f, out_f), lambda i: (0, 0)),     # weight, resident (single-buffered)
        _resident_spec((1, out_f), lambda i: (0, 0)),        # bias
    ]
    if with_res:
        inputs.append(residual)
        in_specs.append(pl.BlockSpec((tile, out_f), lambda i: (i, 0)))
    if with_ln:
        inputs += [gamma.reshape(1, out_f), beta.reshape(1, out_f)]
        in_specs += [_resident_spec((1, out_f), lambda i: (0, 0)),
                     _resident_spec((1, out_f), lambda i: (0, 0))]

    kernel = _make_fused_linear_kernel(eps=float(eps), activation=activation,
                                       with_residual=with_res, with_ln=with_ln,
                                       out_features=out_f)

    res_bytes = (residual.size * jnp.dtype(residual.dtype).itemsize) if with_res else 0
    cost = pl.CostEstimate(
        flops=int(2 * rows_p * in_f * out_f),
        transcendentals=int((rows_p * out_f if activation else 0) + (rows_p if with_ln else 0)),
        bytes_accessed=int(x.size * x_itemsize + weight.size * w_itemsize
                           + rows_p * out_f * out_itemsize + res_bytes))

    n_w_buf = 1 if _single_buffering_supported() else 2
    vmem_need = (2 * tile * in_f * x_itemsize                    # x block (double-buffered)
                 + n_w_buf * in_f * out_f * w_itemsize           # resident weight
                 + 2 * tile * out_f * out_itemsize               # out block
                 + (2 * tile * out_f * x_itemsize if with_res else 0)
                 + tile * out_f * 4                              # f32 epilogue temporary
                 + 8 * out_f * 4)                                # bias/gamma/beta

    out = pl.pallas_call(
        kernel,
        out_shape=jax.ShapeDtypeStruct((rows_p, out_f), out_dtype),
        grid=(grid_rows,),
        in_specs=in_specs,
        out_specs=pl.BlockSpec((tile, out_f), lambda i: (i, 0)),
        compiler_params=pltpu.CompilerParams(
            dimension_semantics=("parallel",),
            vmem_limit_bytes=_scoped_vmem(vmem_need)),
        cost_estimate=cost,
    )(*inputs)

    return out[:rows] if rows_p != rows else out


# ----------------------------------------------------------------------------- attention kernel


def _heads_per_group(num_heads, head_dim):
    # Smallest group of heads whose packed width is a multiple of 128 lanes (e.g. 2 heads at d=64)
    # so q/k/v/ctx blocks are lane-dense and the (batch, group) grid has many parallel steps.
    # Falls back to all heads (block == full H) when H itself is narrower than 128 lanes.
    for cand in range(1, num_heads + 1):
        if num_heads % cand == 0 and (cand * head_dim) % 128 == 0:
            return cand
    return num_heads


def _attention_kernel(heads, head_dim, q_ref, k_ref, v_ref, m_ref, o_ref):
    # Blocks: q/k/v/o are (S, heads*head_dim) in head-packed layout; mask is (1, S) additive.
    # The 1/sqrt(d) score scale is already folded into the Q projection weights.
    mask = m_ref[...].astype(jnp.float32)                                   # (1, S), broadcast over q
    ctx_parts = []
    for h in range(heads):                                                  # small static loop (e.g. 2)
        lo = h * head_dim
        q = q_ref[:, lo:lo + head_dim]                                      # (S, d) bf16 -> MXU
        k = k_ref[:, lo:lo + head_dim]
        v = v_ref[:, lo:lo + head_dim]
        s = jnp.dot(q, k.T, preferred_element_type=jnp.float32) + mask      # (S, S) f32 scores
        s_max = jnp.max(s, axis=-1, keepdims=True)
        e = jnp.exp(s - s_max)
        p = e * pl.reciprocal(jnp.sum(e, axis=-1, keepdims=True), approx=True)
        # TODO(synk): attention_probs dropout omitted (eval mode).
        ctx_parts.append(jnp.dot(p.astype(v.dtype), v, preferred_element_type=jnp.float32))
    o_ref[...] = jnp.concatenate(ctx_parts, axis=-1).astype(o_ref.dtype)    # one lane-dense store


def multi_head_attention(q, k, v, mask, *, num_heads, out_dtype=None):
    """q/k/v: (B, S, H) head-packed (no head transposes); mask: (B, 1, 1, S) additive.
    Returns context (B, S, H). Assumes the 1/sqrt(d) score scale is folded into q."""
    B, S, H = q.shape
    d = H // num_heads
    hg = _heads_per_group(num_heads, d)
    gd = hg * d
    num_groups = num_heads // hg
    out_dtype = out_dtype or q.dtype
    mask3d = mask.reshape(B, 1, S).astype(jnp.float32)

    qkv_spec = pl.BlockSpec((None, S, gd), lambda b, g: (b, 0, g))
    in_bytes = jnp.dtype(q.dtype).itemsize
    out_bytes = jnp.dtype(out_dtype).itemsize

    cost = pl.CostEstimate(
        flops=int(4 * B * num_heads * S * S * d),          # QK^T and PV matmuls
        transcendentals=int(B * num_heads * S * S),        # exp
        bytes_accessed=int(3 * B * S * H * in_bytes + B * S * 4 + B * S * H * out_bytes))

    vmem_need = (3 * 2 * S * gd * in_bytes                 # q/k/v blocks, double-buffered
                 + 2 * S * gd * out_bytes                  # ctx block
                 + 2 * S * 4                               # mask
                 + (3 * S * S + 2 * S * gd) * 4 * hg)      # f32 scores/softmax/ctx temporaries

    # TODO(synk): for long sequences add a query-tile grid axis with an online (flash) softmax
    # instead of materializing full (S, S) scores per head.
    return pl.pallas_call(
        functools.partial(_attention_kernel, hg, d),
        out_shape=jax.ShapeDtypeStruct((B, S, H), out_dtype),
        grid=(B, num_groups),
        in_specs=[qkv_spec, qkv_spec, qkv_spec,
                  pl.BlockSpec((None, 1, S), lambda b, g: (b, 0, 0))],
        out_specs=pl.BlockSpec((None, S, gd), lambda b, g: (b, 0, g)),
        compiler_params=pltpu.CompilerParams(
            dimension_semantics=("parallel", "parallel"),
            vmem_limit_bytes=_scoped_vmem(vmem_need)),
        cost_estimate=cost,
    )(q, k, v, mask3d)


# ----------------------------------------------------------------------------- full layer


def bert_understanding_layer(params, input_tensor1, attention_mask1,
                             input_tensor2, attention_mask2, *,
                             num_heads, eps=1e-12, row_tile=512,
                             matmul_dtype=jnp.bfloat16):
    B, S1, H = input_tensor1.shape
    S2 = input_tensor2.shape[1]
    S = S1 + S2
    d = H // num_heads
    scale = 1.0 / math.sqrt(d)

    feats = jnp.concatenate([input_tensor1, input_tensor2], axis=1)       # (B, S, H)
    mask = jnp.concatenate([attention_mask1, attention_mask2], axis=-1)   # (B, 1, 1, S)

    rows = B * S
    out_dtype = feats.dtype
    act_dtype = matmul_dtype if matmul_dtype is not None else out_dtype
    x2d = feats.reshape(rows, H).astype(act_dtype)   # single wrapper cast; reused as residual

    lin = functools.partial(fused_linear, eps=eps, row_tile=row_tile, matmul_dtype=matmul_dtype)

    # --- BertSelfAttention: fused QKV projection (activations stream HBM->VMEM once, one launch
    # instead of three); 1/sqrt(d) folded into the Q weight/bias (free vs scaling (S,S) scores).
    qkv_w = jnp.concatenate([params["q_w"] * scale, params["k_w"], params["v_w"]], axis=1)
    qkv_b = jnp.concatenate([params["q_b"] * scale, params["k_b"], params["v_b"]])
    qkv = lin(x2d, qkv_w, qkv_b, out_dtype=act_dtype)                     # (rows, 3H)
    q = qkv[:, :H].reshape(B, S, H)
    k = qkv[:, H:2 * H].reshape(B, S, H)
    v = qkv[:, 2 * H:].reshape(B, S, H)

    # Attention stays in (B, S, H) head-packed layout: no transposes, lane-dense ctx writeback.
    ctx2d = multi_head_attention(q, k, v, mask, num_heads=num_heads,
                                 out_dtype=act_dtype).reshape(rows, H)

    # --- BertSelfOutput: dense -> dropout(eval) -> +residual -> LayerNorm
    att = lin(ctx2d, params["attn_out_w"], params["attn_out_b"],
              residual=x2d, gamma=params["attn_ln_g"], beta=params["attn_ln_b"],
              out_dtype=act_dtype)

    att3d = att.reshape(B, S, H)
    v_att = att3d[:, :S1].reshape(B * S1, H)
    t_att = att3d[:, S1:].reshape(B * S2, H)

    def ffn(x_att, prefix):
        inter = lin(x_att, params[prefix + "_int_w"], params[prefix + "_int_b"],
                    activation="gelu", out_dtype=act_dtype)               # BertIntermediate
        return lin(inter, params[prefix + "_out_w"], params[prefix + "_out_b"],
                   residual=x_att, gamma=params[prefix + "_ln_g"],
                   beta=params[prefix + "_ln_b"], out_dtype=out_dtype)    # BertOutput

    v_feats = ffn(v_att, "v").reshape(B, S1, H)
    t_feats = ffn(t_att, "t").reshape(B, S2, H)
    return v_feats, t_feats


# ----------------------------------------------------------------------------- reference & test


def reference_forward(params, x1, m1, x2, m2, *, num_heads, eps):
    feats = jnp.concatenate([x1, x2], axis=1)
    mask = jnp.concatenate([m1, m2], axis=-1)
    B, S, H = feats.shape
    d = H // num_heads

    def lin(x, w, b):
        return x @ w + b

    def ln(x, g, b):
        mu = x.mean(-1, keepdims=True)
        var = ((x - mu) ** 2).mean(-1, keepdims=True)
        return (x - mu) * jax.lax.rsqrt(var + eps) * g + b

    def heads(x):
        return x.reshape(B, S, num_heads, d).transpose(0, 2, 1, 3)

    qh = heads(lin(feats, params["q_w"], params["q_b"]))
    kh = heads(lin(feats, params["k_w"], params["k_b"]))
    vh = heads(lin(feats, params["v_w"], params["v_b"]))
    scores = jnp.einsum("bhqd,bhkd->bhqk", qh, kh) / math.sqrt(d) + mask
    probs = jax.nn.softmax(scores, axis=-1)
    ctx = jnp.einsum("bhqk,bhkd->bhqd", probs, vh).transpose(0, 2, 1, 3).reshape(B, S, H)
    att = ln(lin(ctx, params["attn_out_w"], params["attn_out_b"]) + feats,
             params["attn_ln_g"], params["attn_ln_b"])
    S1 = x1.shape[1]
    v_att, t_att = att[:, :S1], att[:, S1:]

    def ffn(x, p):
        inter = _gelu_tanh(lin(x, params[p + "_int_w"], params[p + "_int_b"]))
        return ln(lin(inter, params[p + "_out_w"], params[p + "_out_b"]) + x,
                  params[p + "_ln_g"], params[p + "_ln_b"])

    return ffn(v_att, "v"), ffn(t_att, "t")


def init_params(key, H, I):
    ks = jax.random.split(key, 16)

    def w(k, shape):
        return jax.random.normal(k, shape, jnp.float32) * 0.02

    ones = jnp.ones((H,), jnp.float32)
    zeros = jnp.zeros((H,), jnp.float32)
    return {
        "q_w": w(ks[0], (H, H)), "q_b": w(ks[1], (H,)),
        "k_w": w(ks[2], (H, H)), "k_b": w(ks[3], (H,)),
        "v_w": w(ks[4], (H, H)), "v_b": w(ks[5], (H,)),
        "attn_out_w": w(ks[6], (H, H)), "attn_out_b": w(ks[7], (H,)),
        "attn_ln_g": ones, "attn_ln_b": zeros,
        "v_int_w": w(ks[8], (H, I)), "v_int_b": w(ks[9], (I,)),
        "v_out_w": w(ks[10], (I, H)), "v_out_b": w(ks[11], (H,)),
        "v_ln_g": ones, "v_ln_b": zeros,
        "t_int_w": w(ks[12], (H, I)), "t_int_b": w(ks[13], (I,)),
        "t_out_w": w(ks[14], (I, H)), "t_out_b": w(ks[15], (H,)),
        "t_ln_g": ones, "t_ln_b": zeros,
    }


if __name__ == "__main__":
    # Small shapes consistent with the module: hidden=32, heads=4, intermediate=64, batch=2, seq=8+8.
    B, S1, S2, H, I, NH = 2, 8, 8, 32, 64, 4
    eps = 1e-12

    key = jax.random.PRNGKey(0)
    kx1, kx2, kp = jax.random.split(key, 3)

    x1 = jax.random.normal(kx1, (B, S1, H), jnp.float32)
    x2 = jax.random.normal(kx2, (B, S2, H), jnp.float32)
    # Standard BERT extended additive masks (0 = attend, -10000 = masked).
    m1 = jnp.zeros((B, 1, 1, S1), jnp.float32)
    m2 = jnp.zeros((B, 1, 1, S2), jnp.float32).at[1, :, :, S2 - 2:].set(-10000.0)

    params = init_params(kp, H, I)

    v_out, t_out = bert_understanding_layer(
        params, x1, m1, x2, m2,
        num_heads=NH, eps=eps, row_tile=512, matmul_dtype=jnp.bfloat16)
    v_out, t_out = jax.block_until_ready((v_out, t_out))

    v_ref, t_ref = reference_forward(params, x1, m1, x2, m2, num_heads=NH, eps=eps)
    err = max(float(jnp.max(jnp.abs(v_out - v_ref))),
              float(jnp.max(jnp.abs(t_out - t_ref))))
    # bf16 MXU operands AND bf16-stored activations/residuals with f32 accumulation/epilogue ->
    # loose tolerance vs the pure-f32 reference.
    assert err < 7.5e-2, f"mismatch vs reference: max abs err {err}"
    print("KERNEL_OK")
</pallas_src>

<mosaic_0001>
module attributes {stable_mosaic.version = 11 : i64} {
  func.func @probe(%arg0: i32, %arg1: memref<8x128xf32, #tpu.memory_space<vmem>>, %arg2: memref<8x128xf32, #tpu.memory_space<vmem>>, %arg3: memref<8x128xf32, #tpu.memory_space<vmem>>) attributes {dimension_semantics = [#tpu.dimension_semantics<arbitrary>], iteration_bounds = array<i64: 2>, scalar_prefetch = 0 : i64, scratch_operands = 0 : i64, tpu.core_type = #tpu.core_type<tc>, window_params = [{transform_indices = @transform_0, window_bounds = array<i64: 8, 128>}, {pipeline_mode = #tpu.pipeline_mode<synchronous>, transform_indices = @transform_1, window_bounds = array<i64: 8, 128>}, {transform_indices = @transform_2, window_bounds = array<i64: 8, 128>}]} {
    %c0 = arith.constant 0 : index
    %c0_0 = arith.constant 0 : index
    %0 = vector.load %arg1[%c0, %c0_0] : memref<8x128xf32, #tpu.memory_space<vmem>>, vector<8x128xf32>
    %c0_1 = arith.constant 0 : index
    %c0_2 = arith.constant 0 : index
    %1 = vector.load %arg2[%c0_1, %c0_2] : memref<8x128xf32, #tpu.memory_space<vmem>>, vector<8x128xf32>
    %2 = arith.addf %0, %1 : vector<8x128xf32>
    %c0_3 = arith.constant 0 : index
    %c0_4 = arith.constant 0 : index
    %3 = vector.load %arg3[%c0_3, %c0_4] : memref<8x128xf32, #tpu.memory_space<vmem>>, vector<8x128xf32>
    tpu.vector_store %arg3[%c0_3, %c0_4], %2 {strides = array<i32>} : memref<8x128xf32, #tpu.memory_space<vmem>>, vector<8x128xf32>,
    return
  }
  func.func @transform_0(%arg0: i32) -> (i32, i32) {
    %c0_i32 = arith.constant 0 : i32
    %c0_i32_0 = arith.constant 0 : i32
    return %arg0, %c0_i32 : i32, i32
  }
  func.func @transform_1(%arg0: i32) -> (i32, i32) {
    %c0_i32 = arith.constant 0 : i32
    %c0_i32_0 = arith.constant 0 : i32
    %c0_i32_1 = arith.constant 0 : i32
    return %c0_i32, %c0_i32_0 : i32, i32
  }
  func.func @transform_2(%arg0: i32) -> (i32, i32) {
    %c0_i32 = arith.constant 0 : i32
    %c0_i32_0 = arith.constant 0 : i32
    return %arg0, %c0_i32 : i32, i32
  }
}

module attributes {stable_mosaic.version = 11 : i64} {
  func.func @kernel(%arg0: i32, %arg1: memref<32x32xbf16, #tpu.memory_space<vmem>>, %arg2: memref<32x96xbf16, #tpu.memory_space<vmem>>, %arg3: memref<1x96xf32, #tpu.memory_space<vmem>>, %arg4: memref<32x96xbf16, #tpu.memory_space<vmem>>) attributes {dimension_semantics = [#tpu.dimension_semantics<parallel>], iteration_bounds = array<i64: 1>, scalar_prefetch = 0 : i64, scratch_operands = 0 : i64, tpu.core_type = #tpu.core_type<tc>, window_params = [{transform_indices = @transform_0, window_bounds = array<i64: 32, 32>}, {pipeline_mode = #tpu.pipeline_mode<synchronous>, transform_indices = @transform_1, window_bounds = array<i64: 32, 96>}, {pipeline_mode = #tpu.pipeline_mode<synchronous>, transform_indices = @transform_2, window_bounds = array<i64: 1, 96>}, {transform_indices = @transform_3, window_bounds = array<i64: 32, 96>}]} {
    %c0 = arith.constant 0 : index
    %c0_0 = arith.constant 0 : index
    %0 = vector.load %arg1[%c0, %c0_0] : memref<32x32xbf16, #tpu.memory_space<vmem>>, vector<32x32xbf16>
    %c0_1 = arith.constant 0 : index
    %c0_2 = arith.constant 0 : index
    %1 = vector.load %arg2[%c0_1, %c0_2] : memref<32x96xbf16, #tpu.memory_space<vmem>>, vector<32x96xbf16>
    %cst = arith.constant dense<0.000000e+00> : vector<32x96xf32>
    %2 = tpu.matmul %0, %1, %cst {dimension_numbers = #tpu.dot_dimension_numbers<[1], [0], [0], [1], [0, 0, 1, 1], [], []>} : vector<32x32xbf16>, vector<32x96xbf16>, vector<32x96xf32> -> vector<32x96xf32>
    %c0_3 = arith.constant 0 : index
    %c0_4 = arith.constant 0 : index
    %3 = vector.load %arg3[%c0_3, %c0_4] : memref<1x96xf32, #tpu.memory_space<vmem>>, vector<1x96xf32>
    %4 = vector.broadcast %3 : vector<1x96xf32> to vector<32x96xf32>
    %5 = arith.addf %2, %4 : vector<32x96xf32>
    %6 = arith.truncf %5 : vector<32x96xf32> to vector<32x96xbf16>
    %c0_5 = arith.constant 0 : index
    %c0_6 = arith.constant 0 : index
    %7 = vector.load %arg4[%c0_5, %c0_6] : memref<32x96xbf16, #tpu.memory_space<vmem>>, vector<32x96xbf16>
    tpu.vector_store %arg4[%c0_5, %c0_6], %6 {strides = array<i32>} : memref<32x96xbf16, #tpu.memory_space<vmem>>, vector<32x96xbf16>,
    return
  }
  func.func @transform_0(%arg0: i32) -> (i32, i32) {
    %c0_i32 = arith.constant 0 : i32
    %c0_i32_0 = arith.constant 0 : i32
    return %arg0, %c0_i32 : i32, i32
  }
  func.func @transform_1(%arg0: i32) -> (i32, i32) {
    %c0_i32 = arith.constant 0 : i32
    %c0_i32_0 = arith.constant 0 : i32
    %c0_i32_1 = arith.constant 0 : i32
    return %c0_i32, %c0_i32_0 : i32, i32
  }
  func.func @transform_2(%arg0: i32) -> (i32, i32) {
    %c0_i32 = arith.constant 0 : i32
    %c0_i32_0 = arith.constant 0 : i32
    %c0_i32_1 = arith.constant 0 : i32
    return %c0_i32, %c0_i32_0 : i32, i32
  }
  func.func @transform_3(%arg0: i32) -> (i32, i32) {
    %c0_i32 = arith.constant 0 : i32
    %c0_i32_0 = arith.constant 0 : i32
    return %arg0, %c0_i32 : i32, i32
  }
}

</mosaic_0001>

<bundles_post_ra>
// kernel: tpu_custom_call.1
= control target key start
LH: loop header
LB: loop body
LE: loop exit
PB: predicated region body
PF: predicated region fallthrough
CT: control target
= control target key end

     0   :  { %7 = vsyncpa [#allocation3], 0  ;;  %s633_s0 = inlined_call_operand.hbm [shape: f32[16,128], index: 0, kind: input, shape index: {}]   ;;  %s634_s1 = inlined_call_operand.hbm [shape: f32[8,128], index: 1, kind: input, shape index: {}]   ;;  %s635_s2 = inlined_call_operand.hbm [shape: f32[16,128], index: 2, kind: output, shape index: {}]  }
   0x1   :  { %9 = vsyncpa [#allocation3 + $0x1], 0 }
   0x2   :  { %10 = vsyncpa [#allocation6], 0 }
   0x3   :  { %11 = vsyncpa [#allocation4], 0 }
   0x4   :  { %13 = vsyncpa [#allocation4 + $0x1], 0  ;;  %s495_s9 = smov 0   ;;  %s497_s10 = smov 0  }
   0x5   :  { %s499_s11 = smov 0   ;;  %s501_s12 = smov 0  }
   0x6 LB: > { %s516_s13 = sadd.s32 4294967295, %s477_s12   ;;  %s276_s14 = sadd.s32 4294967294, %s477_s12   ;;  %s477_s12 = sphi %s501_s12, %s645_s12   ;;  %s473_s11 = sphi %s499_s11, %s644_s11   ;;  %s469_s10 = sphi %s497_s10, %s643_s10   ;;  %s465_s9 = sphi %s495_s9, %s642_s9  }
   0x7   : > { %p39_p0 = scmp.ne.s32.totalorder %s469_s10, %s465_s9  ;;  %p40_p1 = scmp.eq.s32.totalorder %s516_s13, 0 }
   0x8   : > { %p84_p2 = scmp.eq.s32.totalorder %s516_s13, 1  ;;  %p90_p3 = scmp.eq.s32.totalorder %s276_s14, 1 }
   0x9   : > { %p525_p4 = por %p40_p1, %p39_p0  ;;  %p277_p5 = scmp.ge.s32.totalorder %s477_s12, 1 }
   0xa   : > { %p530_p6 = por %p90_p3, %p39_p0  ;;  %p97_p7 = scmp.lt.s32.totalorder %s477_s12, 3 }
   0xb   : > { %s109_s19 = sshll.u32 %s634_s1, 4  ;;  %s479_s21 = smov [#allocation5]   ;;  %s110_s19 = int_to_ptr.hbm [resolvable:$true] %s109_s19 }
   0xc   : > { %p538_p8 = pnand %p277_p5, %p97_p7  ;;  %s111_s22 = sshll.u32 %s479_s21, 4  ;;  %s112_s22 = int_to_ptr.vmem [resolvable:$true] %s111_s22 }
   0xd   : > { %s548_s23 = sadd.s32 1, %s477_s12   ;;  %s26_s24 = sadd.s32 1, %s473_s11 }
   0xe   : > { %p298_p10 = pneg %p538_p8  ;;  %s23_s25 = ssub.s32 %s477_s12, %s548_s23 }
   0xf   : > { %p24_p12 = scmp.eq.s32.totalorder %s23_s25, 0  ;;  %p33_p13 = scmp.ne.s32.totalorder %s473_s11, %s469_s10 }
  0x10   : > { %p299_p11 = pnand %p298_p10, %p40_p1  ;;  %p34_p0 = scmp.eq.s32.totalorder %s477_s12, 0 }
  0x11   : > { %s557_s26 = scalar_select %p24_p12, %s473_s11, %s26_s24  }
  0x12   : > { %301 = dma.hbm_to_vmem [thread:$0]  (!%p299_p11), %s110_s19, 128, %s112_s22, [#allocation6]  }
  0x13   : > { %p561_p3 = por %p84_p2, %p33_p13  ;;  %p311_p5 = scmp.lt.s32.totalorder %s477_s12, 2 }
  0x14   : > { %s122_s28 = sand.u32 1, %s473_s11   ;;  %s281_s29 = sshll.u32 %s477_s12, 3 }
  0x15   : > { %p35_p7 = por %p34_p0, %p33_p13  ;;  %s280_s30 = sshll.u32 %s122_s28, 3 }
  0x16   : > { %s130_s5 = scalar_lea.hbm %s633_s0, %s281_s29  ;;  %s126_s7 = scalar_lea.vmem [#allocation2], %s280_s30 }
  0x17   : > { %s132_s6 = sshll.u32 %s130_s5, 4  ;;  %s134_s8 = sshll.u32 %s126_s7, 4  ;;  %s133_s6 = int_to_ptr.hbm [resolvable:$true] %s132_s6  ;;  %s135_s8 = int_to_ptr.vmem [resolvable:$true] %s134_s8 }
  0x18   : > { %p571_p10 = pnand %p311_p5, %p35_p7  ;;  %s123_s17 = scalar_lea.sflag [#allocation3], %s122_s28 }
  0x19   : > { %s377_s18 = sshra.s32 %s133_s6, 4  ;;  %s384_s24 = scalar_lea.hbm %s633_s0, 16  ;;  %s378_s18 = int_to_ptr.hbm [resolvable:$true] %s377_s18 }
  0x1a   : > { %s379_s19 = scalar_lea.hbm %s378_s18, 8  ;;  %p381_p11 = pneg %p571_p10 }
  0x1b   : > { %p380_p2 = scmp.ne.s32.totalorder %s378_s18, %s379_s19  ;;  %p385_p0 = scmp.lt.s32.totalorder %s378_s18, %s633_s0 }
  0x1c   : > { %p386_p5 = scmp.lt.s32.totalorder %s384_s24, %s379_s19 }
  0x1d   : > { %p382_p12 = pnand %p381_p11, %p380_p2 }
  0x1e   : > { %p387_p7 = por %p386_p5, %p385_p0 }
  0x1f   : > { %p383_p13 = pneg %p382_p12 }
  0x21   : > { %p388_p9 = pnand %p387_p7, %p383_p13 }
  0x23   : > { %391 = shalt.err (!%p388_p9)
}
  0x24   : > { %305 = dma.hbm_to_vmem [thread:$0]  (!%p571_p10), %s133_s6, 128, %s135_s8, %s123_s17  }
  0x25   : > { %143 = sbr.rel (%p538_p8) target bundleno = 60 (0x3c), region = 28  ;;  %s588_s28 = sand.u32 (!%p538_p8), 1, %s469_s10  }
  0x26   : > { %s283_s30 = sshll.u32 (!%p538_p8), %s588_s28, 3  ;;  %s146_s3 = scalar_lea.sflag (!%p538_p8), [#allocation3], %s588_s28 }
  0x27   : > { %s149_s4 = scalar_lea.vmem (!%p538_p8), [#allocation2], %s283_s30 }
  0x2a   : > { %452 = dma.done.wait (%p525_p4), %s146_s3, 128  }
  0x2b   : > { %454 = vsyncadd (%p525_p4), %s146_s3, 4294967168 }
  0x2c   : > { %456 = dma.done.wait (%p40_p1), [#allocation6], 128  }
  0x2d   : > { %458 = vsyncadd (%p40_p1), [#allocation6], 4294967168  ;;  %s287_s20 = sshll.u32 %s516_s13, 3  ;;  %s175_s8 = scalar_lea.vmem [#allocation7], %s283_s30  ;;  %v176_v0 = vld [vmem:[%s149_s4] sm:$0xff]  ;;  %v177_v1 = vld [vmem:[#allocation5] sm:$0xff] }
  0x2e   : > { %s191_s7 = scalar_lea.hbm %s635_s2, %s287_s20  ;;  %s193_s14 = sshll.u32 %s175_s8, 4  ;;  %v178_v2 = vadd.f32 %v177_v1, %v176_v0  ;;  %s194_s14 = int_to_ptr.vmem [resolvable:$true] %s193_s14 }
  0x2f   : > { %s195_s17 = sshll.u32 %s191_s7, 4  ;;  %s181_s15 = scalar_lea.sflag [#allocation4], %s588_s28  ;;  %s196_s17 = int_to_ptr.hbm [resolvable:$true] %s195_s17 }
  0x30   : > { %179 = vst [vmem:[%s175_s8] sm:$0xff] %v178_v2  ;;  %s421_s18 = sshra.s32 %s196_s17, 4  ;;  %s427_s22 = scalar_lea.hbm %s635_s2, 16  ;;  %s422_s18 = int_to_ptr.hbm [resolvable:$true] %s421_s18 }
  0x31   : > { %s423_s19 = scalar_lea.hbm %s422_s18, 8  ;;  %p428_p9 = scmp.lt.s32.totalorder %s422_s18, %s635_s2 }
  0x32   : > { %p424_p1 = scmp.ne.s32.totalorder %s422_s18, %s423_s19  ;;  %p429_p10 = scmp.lt.s32.totalorder %s427_s22, %s423_s19 }
  0x34   : > { %p425_p4 = pnand %p424_p1, %p561_p3  ;;  %p430_p2 = por %p429_p10, %p428_p9 }
  0x36   : > { %p426_p8 = pneg %p425_p4 }
  0x38   : > { %p431_p11 = pnand %p430_p2, %p426_p8 }
  0x3a   : > { %434 = shalt.err (!%p431_p11)
}
  0x3b   : > { %296 = dma.vmem_to_hbm [thread:$0]  (%p561_p3), %s194_s14, 128, %s196_s17, %s181_s15  }
  0x3c PF: > { %s207_s29 = sand.u32 1, %s465_s9   ;;  %p641_p12 = scmp.ge.s32.totalorder %s477_s12, 2 }
  0x3d   : > { %s208_s28 = scalar_lea.sflag [#allocation4], %s207_s29 }
  0x3e   : > { %p307_p13 = pnand %p641_p12, %p530_p6 }
  0x40   : > { %p308_p0 = pneg %p307_p13 }
  0x42   : > { %460 = dma.done.wait (%p308_p0), %s208_s28, 128  }
  0x43   : > { %462 = vsyncadd (%p308_p0), %s208_s28, 4294967168  ;;  %p16_p5 = scmp.ge.s32.totalorder %s548_s23, 4   ;;  %s642_s9 = smov %s469_s10 }
  0x44   : > { %s643_s10 = smov %s473_s11  ;;  %s644_s11 = smov %s557_s26 }
  0x45   : > { %s645_s12 = smov %s548_s23  ;;  %18 = sbr.rel (!%p16_p5) target bundleno = 6 (0x6), region = 77 }
  0x4a   :  { %214 = vsyncpa [#allocation3], 1 }
  0x4b   :  { %216 = vsyncpa [#allocation3 + $0x1], 1 }
  0x4c   :  { %217 = vsyncpa [#allocation6], 1 }
  0x4d   :  { %218 = vsyncpa [#allocation4], 1 }
  0x4e   :  { %220 = vsyncpa [#allocation4 + $0x1], 1 }

// kernel: tpu_custom_call.1
= control target key start
LH: loop header
LB: loop body
LE: loop exit
PB: predicated region body
PF: predicated region fallthrough
CT: control target
= control target key end

     0   :  { %8 = vsyncpa [#allocation3], 0  ;;  %s295_s0 = inlined_call_operand.hbm [shape: bf16[32,32], index: 0, kind: input, shape index: {}]   ;;  %s296_s1 = inlined_call_operand.hbm [shape: bf16[32,96], index: 1, kind: input, shape index: {}]   ;;  %s297_s2 = inlined_call_operand.vmem [shape: f32[1,96], index: 2, kind: input, shape index: {}]   ;;  %s298_s3 = inlined_call_operand.hbm [shape: bf16[32,96], index: 3, kind: output, shape index: {}]  }
   0x1   :  { %9 = vsyncpa [#allocation6], 0 }
   0x2   :  { %10 = vsyncpa [#allocation4], 0  ;;  %s15_s14 = sshll.u32 %s295_s0, 4  ;;  %s245_s15 = smov [#allocation2]   ;;  %s16_s14 = int_to_ptr.hbm [resolvable:$true] %s15_s14 }
   0x3   :  { %s17_s16 = sshll.u32 %s245_s15, 4  ;;  %s28_s19 = sshll.u32 %s296_s1, 4  ;;  %s18_s16 = int_to_ptr.vmem [resolvable:$true] %s17_s16  ;;  %s29_s19 = int_to_ptr.hbm [resolvable:$true] %s28_s19 }
   0x4   :  { %s246_s20 = smov 64   ;;  %s247_s21 = smov 4  }
   0x5   :  { %23 = dma.hbm_to_vmem [thread:$0]  %s16_s14, 256, %s18_s16, [#allocation3], %s246_s20, %s246_s20, %s247_s21  }
   0x6   :  { %s248_s22 = smov [#allocation5]  }
   0x7   :  { %s30_s23 = sshll.u32 %s248_s22, 4  ;;  %s31_s23 = int_to_ptr.vmem [resolvable:$true] %s30_s23 }
   0x8   :  { %36 = dma.hbm_to_vmem [thread:$0]  %s29_s19, 256, %s31_s23, [#allocation6], %s246_s20, %s246_s20, %s247_s21  }
   0x9   :  { %239 = dma.done.wait [#allocation3], 256  }
   0xa   :  { %240 = vsyncadd [#allocation3], 4294967040 }
   0xb   :  { %241 = dma.done.wait [#allocation6], 256  }
   0xc   :  { %242 = vsyncadd [#allocation6], 4294967040  ;;  %v158_v0 = vld [vmem:[#allocation5 + $0x8] sm:$0xff]  ;;  %v157_v1 = vld [vmem:[#allocation5] sm:$0xff]  ;;  %vm82_vm0 = vcmask 261120   ;;  %vm112_vm1 = vcmask 781312  }
   0xd   :  { %95 = vmatpush.bf16.msra.mxu0 %v158_v0  ;;  %159 = vmatpush.bf16.msra.mxu1 %v158_v0  ;;  %v155_v2 = vld [vmem:[#allocation2] sm:$0xff]  ;;  %v156_v3 = vld [vmem:[#allocation2 + $0x8] sm:$0xff]  ;;  %s249_s24 = smov [#allocation7]  }
   0xe   :  { %v166_v4 = vld [vmem:[%s297_s2] ss:$0 sm:$0xff]  ;;  %s121_s25 = sshll.u32 %s249_s24, 4  ;;  %s123_s2 = sshll.u32 %s298_s3, 4  ;;  %s122_s25 = int_to_ptr.vmem [resolvable:$true] %s121_s25  ;;  %s124_s2 = int_to_ptr.hbm [resolvable:$true] %s123_s2 }
  0x11   :  { %96 = vmatpush.bf16.msra.mxu0 %v157_v1  ;;  %160 = vmatpush.bf16.msra.mxu1 %v157_v1 }
  0x14   :  { %153 = vmatmul.msk.bf16.vlgmr.msra.gmra.mxu0 %vm82_vm0, %v155_v2  ;;  %154 = vmatmul.msk.bf16.vlgmr.msra.gmra.mxu1 %vm82_vm0, %v156_v3 }
  0x91   :  { %v98_v5 = vpop.f32.mrf.mxu0  ;;  %v103_v6 = vpop.f32.mrf.mxu1 }
  0x92   :  { %v99_v7 = vadd.f32 %v166_v4, %v98_v5  ;;  %v104_v8 = vadd.f32 %v166_v4, %v103_v6 }
  0x94   :  { %v108_v9 = vpack.c.bf16 %v99_v7, %v99_v7  ;;  %v110_v10 = vpack.c.bf16 %v104_v8, %v104_v8 }
  0x96   :  { %113 = vst.msk [vmem:[#allocation7] sm:$0xf] %vm112_vm1, %v108_v9 }
  0x97   :  { %115 = vst.msk [vmem:[#allocation7 + $0x8] sm:$0xf] %vm112_vm1, %v110_v10 }
  0x99   :  { %v100_v11 = vpop.f32.mrf.mxu0  ;;  %v105_v12 = vpop.f32.mrf.mxu1 }
  0x9a   :  { %v101_v13 = vadd.f32 %v166_v4, %v100_v11  ;;  %v106_v14 = vadd.f32 %v166_v4, %v105_v12 }
  0x9c   :  { %v109_v15 = vpack.c.bf16 %v101_v13, %v101_v13  ;;  %v111_v16 = vpack.c.bf16 %v106_v14, %v106_v14 }
  0x9e   :  { %114 = vst.msk [vmem:[#allocation7 + $0x4] sm:$0xf] %vm112_vm1, %v109_v15 }
  0x9f   :  { %116 = vst.msk [vmem:[#allocation7 + $0xc] sm:$0xf] %vm112_vm1, %v111_v16 }
  0xa0   :  { %129 = dma.vmem_to_hbm [thread:$0]  %s122_s25, 256, %s124_s2, [#allocation4], %s246_s20, %s246_s20, %s247_s21  }
  0xa1   :  { %243 = dma.done.wait [#allocation4], 256  }
  0xa2   :  { %244 = vsyncadd [#allocation4], 4294967040 }
  0xa3   :  { %134 = vsyncpa [#allocation3], 1 }
  0xa4   :  { %135 = vsyncpa [#allocation6], 1 }
  0xa5   :  { %136 = vsyncpa [#allocation4], 1 }

</bundles_post_ra>
